<compile_context>
chip_gen: v5e
topology: v5e:2x2
jax: 0.10.0
libtpu: 0.0.40
codegen_flags: <defaults>
</compile_context>

<pallas_src>
import jax
import jax.numpy as jnp
from jax.experimental import pallas as pl
from jax.experimental.pallas import tpu as pltpu


def ar_kernel(w_ref, b_ref, x_ref, o_ref):
    # w_ref: (1, W, 1)  f32 VMEM  (Linear weight, broadcastable over batch/lanes)
    # b_ref: (1,)       f32 SMEM  (Linear bias)
    # x_ref: (TB, W, TN) VMEM input tile
    # o_ref: (TB, TN)    VMEM lane-dense output tile
    xt = x_ref[...].astype(jnp.float32)            # single contiguous load
    wv = w_ref[...]                                # (1, W, 1) -> broadcasts
    acc = jnp.sum(xt * wv, axis=1) + b_ref[0]      # sublane (XLU) reduce + bias
    o_ref[...] = acc.astype(o_ref.dtype)


def _round_up(x, m):
    return ((x + m - 1) // m) * m


def _choose_tiles(B, W, N, *, itemsize=4, budget_bytes=24 << 20):
    """Pick (TB, TN): lane-dense, sublane-aligned, W-aware VMEM budget."""
    LANE, SUB = 128, 8
    tb = min(_round_up(B, SUB), 64)
    tn = min(_round_up(N, LANE), 1024)

    def footprint(tb_, tn_):
        # double-buffered x input tile + double-buffered output tile
        return 2 * tb_ * W * tn_ * itemsize + 2 * tb_ * tn_ * itemsize

    # Shrink the lane tile first, then the batch tile, to fit the budget.
    while footprint(tb, tn) > budget_bytes and tn > LANE:
        tn = max(LANE, (tn // 2) // LANE * LANE)
    while footprint(tb, tn) > budget_bytes and tb > SUB:
        tb = max(SUB, (tb // 2) // SUB * SUB)

    # v7x megacore: if B yields only one grid step, make sure N splits into
    # at least 2 parallel steps (when N is large enough to split).
    n_pad = _round_up(N, LANE)
    if _round_up(B, SUB) <= tb and n_pad >= 2 * LANE:
        tn = min(tn, _round_up(pl.cdiv(n_pad, 2), LANE))

    return tb, tn


def ar_forward(x, weight, bias):
    """x: (B, W, N) f32; weight: (1, W) f32; bias: (1,) f32 -> (B, 1, N) f32."""
    B, W, N = x.shape
    TB, TN = _choose_tiles(B, W, N)

    # Pad batch / series dims so every block is fully (8,128)-aligned.
    B_pad = _round_up(B, TB)
    N_pad = _round_up(N, TN)
    if (B_pad, N_pad) != (B, N):
        x = jnp.pad(x, ((0, B_pad - B), (0, 0), (0, N_pad - N)))

    grid = (B_pad // TB, N_pad // TN)

    w3d = weight.reshape(1, W, 1).astype(jnp.float32)
    b1d = bias.reshape(1).astype(jnp.float32)

    cost = pl.CostEstimate(
        flops=2 * B_pad * W * N_pad,
        transcendentals=0,
        bytes_accessed=B_pad * W * N_pad * 4 + B_pad * N_pad * 4 + (W + 1) * 4,
    )

    out2d = pl.pallas_call(
        ar_kernel,
        out_shape=jax.ShapeDtypeStruct((B_pad, N_pad), x.dtype),
        grid=grid,
        in_specs=[
            pl.BlockSpec(memory_space=pltpu.MemorySpace.VMEM),   # weight (1, W, 1)
            pl.BlockSpec(memory_space=pltpu.MemorySpace.SMEM),   # bias (1,)
            pl.BlockSpec((TB, W, TN), lambda i, j: (i, 0, j)),   # x tile
        ],
        out_specs=pl.BlockSpec((TB, TN), lambda i, j: (i, j)),
        compiler_params=pltpu.CompilerParams(
            dimension_semantics=("parallel", "parallel"),
            vmem_limit_bytes=32 << 20,
        ),
        cost_estimate=cost,
    )(w3d, b1d, x)

    # Drop padding and restore the PyTorch output layout (B, 1, N).
    return out2d[:B, :N].reshape(B, 1, N)


if __name__ == "__main__":
    key = jax.random.PRNGKey(0)
    k_x, k_w, k_b = jax.random.split(key, 3)

    B, window, N = 2, 8, 16        # batch, window (time steps), number of series

    x = jax.random.normal(k_x, (B, window, N), dtype=jnp.float32)

    # Deterministic parameter init, matching nn.Linear's uniform(-1/sqrt(in), 1/sqrt(in)).
    bound = 1.0 / (window ** 0.5)
    weight = jax.random.uniform(k_w, (1, window), jnp.float32, -bound, bound)
    bias = jax.random.uniform(k_b, (1,), jnp.float32, -bound, bound)

    out = ar_forward(x, weight, bias)
    out = jax.block_until_ready(out)

    # Reference check against plain JAX (same math as the PyTorch module).
    ref = jnp.einsum("bwn,ow->bon", x, weight) + bias[None, :, None]
    assert out.shape == (B, 1, N), out.shape
    assert jnp.allclose(out, ref, atol=1e-5, rtol=1e-5), "mismatch vs reference"

    print("KERNEL_OK")
</pallas_src>

<mosaic_0001>
module attributes {stable_mosaic.version = 11 : i64} {
  func.func @ar_kernel(%arg0: i32, %arg1: i32, %arg2: memref<1x8x1xf32, #tpu.memory_space<vmem>>, %arg3: memref<1xf32, #tpu.memory_space<smem>>, %arg4: memref<8x8x128xf32, #tpu.memory_space<vmem>>, %arg5: memref<8x128xf32, #tpu.memory_space<vmem>>) attributes {dimension_semantics = [#tpu.dimension_semantics<parallel>, #tpu.dimension_semantics<parallel>], iteration_bounds = array<i64: 1, 1>, scalar_prefetch = 0 : i64, scratch_operands = 0 : i64, tpu.core_type = #tpu.core_type<tc>, window_params = [{pipeline_mode = #tpu.pipeline_mode<synchronous>, transform_indices = @transform_0, window_bounds = array<i64: 1, 8, 1>}, {transform_indices = @transform_1, window_bounds = array<i64: 1>}, {transform_indices = @transform_2, window_bounds = array<i64: 8, 8, 128>}, {transform_indices = @transform_3, window_bounds = array<i64: 8, 128>}]} {
    %c0 = arith.constant 0 : index
    %c0_0 = arith.constant 0 : index
    %c0_1 = arith.constant 0 : index
    %0 = vector.load %arg4[%c0, %c0_0, %c0_1] : memref<8x8x128xf32, #tpu.memory_space<vmem>>, vector<8x8x128xf32>
    %c0_2 = arith.constant 0 : index
    %c0_3 = arith.constant 0 : index
    %c0_4 = arith.constant 0 : index
    %1 = vector.load %arg2[%c0_2, %c0_3, %c0_4] : memref<1x8x1xf32, #tpu.memory_space<vmem>>, vector<1x8x1xf32>
    %2 = vector.broadcast %1 : vector<1x8x1xf32> to vector<8x8x128xf32>
    %3 = arith.mulf %0, %2 : vector<8x8x128xf32>
    %cst = arith.constant dense<0.000000e+00> : vector<8x128xf32>
    %4 = vector.multi_reduction <add>, %3, %cst [1] : vector<8x8x128xf32> to vector<8x128xf32>
    %c0_5 = arith.constant 0 : index
    %5 = memref.load %arg3[%c0_5] : memref<1xf32, #tpu.memory_space<smem>>
    %6 = vector.broadcast %5 : f32 to vector<8x128xf32>
    %7 = arith.addf %4, %6 : vector<8x128xf32>
    %c0_6 = arith.constant 0 : index
    %c0_7 = arith.constant 0 : index
    %8 = vector.load %arg5[%c0_6, %c0_7] : memref<8x128xf32, #tpu.memory_space<vmem>>, vector<8x128xf32>
    tpu.vector_store %arg5[%c0_6, %c0_7], %7 {strides = array<i32>} : memref<8x128xf32, #tpu.memory_space<vmem>>, vector<8x128xf32>,
    return
  }
  func.func @transform_0(%arg0: i32, %arg1: i32) -> (i32, i32, i32) {
    %c0_i32 = arith.constant 0 : i32
    %c0_i32_0 = arith.constant 0 : i32
    %c0_i32_1 = arith.constant 0 : i32
    %c0_i32_2 = arith.constant 0 : i32
    return %c0_i32, %c0_i32_0, %c0_i32_1 : i32, i32, i32
  }
  func.func @transform_1(%arg0: i32, %arg1: i32) -> i32 {
    %c0_i32 = arith.constant 0 : i32
    %c0_i32_0 = arith.constant 0 : i32
    return %c0_i32 : i32
  }
  func.func @transform_2(%arg0: i32, %arg1: i32) -> (i32, i32, i32) {
    %c0_i32 = arith.constant 0 : i32
    %c0_i32_0 = arith.constant 0 : i32
    return %arg0, %c0_i32, %arg1 : i32, i32, i32
  }
  func.func @transform_3(%arg0: i32, %arg1: i32) -> (i32, i32) {
    %c0_i32 = arith.constant 0 : i32
    return %arg0, %arg1 : i32, i32
  }
}

</mosaic_0001>

<bundles_post_ra>
// kernel: tpu_custom_call.1
= control target key start
LH: loop header
LB: loop body
LE: loop exit
PB: predicated region body
PF: predicated region fallthrough
CT: control target
= control target key end

     0   :  { %9 = vsyncpa [#allocation4], 0  ;;  %s258_s0 = inlined_call_operand.vmem [shape: f32[1,8,1], index: 0, kind: input, shape index: {}]   ;;  %s259_s1 = inlined_call_operand.<no memory space> [shape: f32[1], index: 1, kind: input, shape index: {}]   ;;  %s260_s2 = inlined_call_operand.hbm [shape: f32[8,8,128], index: 2, kind: input, shape index: {}]   ;;  %s261_s3 = inlined_call_operand.hbm [shape: f32[8,128], index: 3, kind: output, shape index: {}]  }
   0x1   :  { %10 = vsyncpa [#allocation5], 0  ;;  %s19_s14 = sshll.u32 %s260_s2, 4  ;;  %s211_s15 = smov [#allocation3]   ;;  %s20_s14 = int_to_ptr.hbm [resolvable:$true] %s19_s14 }
   0x2   :  { %s21_s16 = sshll.u32 %s211_s15, 4  ;;  %s212_s17 = smov 128   ;;  %s22_s16 = int_to_ptr.vmem [resolvable:$true] %s21_s16 }
   0x3   :  { %s213_s18 = smov 8  }
   0x4   :  { %27 = dma.hbm_to_vmem [thread:$0]  %s20_s14, 1024, %s22_s16, [#allocation4], %s212_s17, %s212_s17, %s213_s18  }
   0x5   :  { %207 = dma.done.wait [#allocation4], 1024  }
   0x6   :  { %208 = vsyncadd [#allocation4], 4294966272  ;;  %v214_v0 = vmov 0   ;;  %v40_v1 = vld [vmem:[%s258_s0] sm:$0xff]  ;;  %v33_v3 = vld [vmem:[#allocation3 + $0x8] sm:$0xff]  ;;  %v245_v11 = vstv %s259_s1  ;;  %vm120_vm0 = vcmask 1041409  }
   0x7   :  { %158 = vset.pattern.permute.xlu0 %v214_v0  ;;  %v32_v2 = vld [vmem:[#allocation3] sm:$0xff]  ;;  %v34_v4 = vld [vmem:[#allocation3 + $0x10] sm:$0xff]  ;;  %v35_v5 = vld [vmem:[#allocation3 + $0x18] sm:$0xff]  ;;  %vm122_vm1 = vcmask 1042434   ;;  %vm124_vm2 = vcmask 1043459   ;;  %vm126_vm3 = vcmask 1044484  }
   0x8   :  { %43 = vperm.xlu0 %158, %v40_v1   ;;  %v36_v6 = vld [vmem:[#allocation3 + $0x20] sm:$0xff]  ;;  %v37_v7 = vld [vmem:[#allocation3 + $0x28] sm:$0xff]  ;;  %v38_v8 = vld [vmem:[#allocation3 + $0x30] sm:$0xff]  ;;  %vm128_vm4 = vcmask 1045509   ;;  %vm130_vm5 = vcmask 1046534   ;;  %s215_s0 = smov [#allocation6]  }
   0x9   :  { %v39_v9 = vld [vmem:[#allocation3 + $0x38] sm:$0xff]  ;;  %s141_s1 = sshll.u32 %s215_s0, 4  ;;  %s143_s24 = sshll.u32 %s261_s3, 4  ;;  %vm132_vm6 = vcmask 1047559   ;;  %s142_s1 = int_to_ptr.vmem [resolvable:$true] %s141_s1  ;;  %s144_s24 = int_to_ptr.hbm [resolvable:$true] %s143_s24 }
  0x7a   :  { %v44_v10 = vpop.permute.xlu0 %43 }
  0x7b   :  { %v46_v12 = vmul.f32 %v44_v10, %v32_v2  ;;  %v47_v13 = vmul.f32 %v44_v10, %v33_v3  ;;  %v48_v14 = vmul.f32 %v44_v10, %v34_v4  ;;  %v49_v15 = vmul.f32 %v44_v10, %v35_v5 }
  0x7c   :  { %v50_v16 = vmul.f32 %v44_v10, %v36_v6  ;;  %v51_v17 = vmul.f32 %v44_v10, %v37_v7  ;;  %v52_v18 = vmul.f32 %v44_v10, %v38_v8  ;;  %v53_v19 = vmul.f32 %v44_v10, %v39_v9 }
  0x7d   :  { %v54_v20 = vrot.slane %v46_v12, 4  ;;  %v60_v21 = vrot.slane %v47_v13, 4  ;;  %v66_v22 = vrot.slane %v48_v14, 4  ;;  %v72_v23 = vrot.slane %v49_v15, 4 }
  0x7e   :  { %v78_v24 = vrot.slane %v50_v16, 4  ;;  %v84_v25 = vrot.slane %v51_v17, 4  ;;  %v90_v26 = vrot.slane %v52_v18, 4  ;;  %v96_v27 = vrot.slane %v53_v19, 4 }
  0x7f   :  { %v55_v28 = vadd.f32 %v54_v20, %v46_v12  ;;  %v61_v29 = vadd.f32 %v60_v21, %v47_v13  ;;  %v67_v30 = vadd.f32 %v66_v22, %v48_v14  ;;  %v73_v31 = vadd.f32 %v72_v23, %v49_v15 }
  0x80   :  { %v79_v32 = vadd.f32 %v78_v24, %v50_v16  ;;  %v85_v33 = vadd.f32 %v84_v25, %v51_v17  ;;  %v91_v34 = vadd.f32 %v90_v26, %v52_v18  ;;  %v97_v35 = vadd.f32 %v96_v27, %v53_v19 }
  0x81   :  { %v56_v36 = vrot.slane %v55_v28, 2  ;;  %v62_v37 = vrot.slane %v61_v29, 2  ;;  %v68_v38 = vrot.slane %v67_v30, 2  ;;  %v74_v39 = vrot.slane %v73_v31, 2 }
  0x82   :  { %v80_v40 = vrot.slane %v79_v32, 2  ;;  %v86_v41 = vrot.slane %v85_v33, 2  ;;  %v92_v42 = vrot.slane %v91_v34, 2  ;;  %v98_v43 = vrot.slane %v97_v35, 2 }
  0x83   :  { %v57_v44 = vadd.f32 %v56_v36, %v55_v28  ;;  %v63_v45 = vadd.f32 %v62_v37, %v61_v29  ;;  %v69_v46 = vadd.f32 %v68_v38, %v67_v30  ;;  %v75_v47 = vadd.f32 %v74_v39, %v73_v31 }
  0x84   :  { %v81_v48 = vadd.f32 %v80_v40, %v79_v32  ;;  %v87_v49 = vadd.f32 %v86_v41, %v85_v33  ;;  %v93_v50 = vadd.f32 %v92_v42, %v91_v34  ;;  %v99_v51 = vadd.f32 %v98_v43, %v97_v35 }
  0x85   :  { %v58_v52 = vrot.slane %v57_v44, 1  ;;  %v64_v53 = vrot.slane %v63_v45, 1  ;;  %v70_v54 = vrot.slane %v69_v46, 1  ;;  %v76_v55 = vrot.slane %v75_v47, 1 }
  0x86   :  { %v82_v56 = vrot.slane %v81_v48, 1  ;;  %v88_v57 = vrot.slane %v87_v49, 1  ;;  %v94_v58 = vrot.slane %v93_v50, 1  ;;  %v100_v59 = vrot.slane %v99_v51, 1 }
  0x87   :  { %v59_v60 = vadd.f32 %v58_v52, %v57_v44  ;;  %v65_v61 = vadd.f32 %v64_v53, %v63_v45  ;;  %v71_v62 = vadd.f32 %v70_v54, %v69_v46  ;;  %v77_v63 = vadd.f32 %v76_v55, %v75_v47 }
  0x88   :  { %v83_v0 = vadd.f32 %v82_v56, %v81_v48  ;;  %v89_v1 = vadd.f32 %v88_v57, %v87_v49  ;;  %v95_v5 = vadd.f32 %v94_v58, %v93_v50  ;;  %v101_v6 = vadd.f32 %v100_v59, %v99_v51 }
  0x89   :  { %v104_v2 = vadd.f32 %v245_v11, %v59_v60  ;;  %v105_v3 = vadd.f32 %v245_v11, %v65_v61  ;;  %v106_v4 = vadd.f32 %v245_v11, %v71_v62  ;;  %v107_v7 = vadd.f32 %v245_v11, %v77_v63 }
  0x8a   :  { %v108_v9 = vadd.f32 %v245_v11, %v83_v0  ;;  %v109_v12 = vadd.f32 %v245_v11, %v89_v1  ;;  %v110_v14 = vadd.f32 %v245_v11, %v95_v5  ;;  %v111_v16 = vadd.f32 %v245_v11, %v101_v6 }
  0x8b   :  { %v121_v8 = vsel %vm120_vm0, %v105_v3, %v104_v2 }
  0x8c   :  { %v123_v10 = vsel %vm122_vm1, %v106_v4, %v121_v8 }
  0x8d   :  { %v125_v13 = vsel %vm124_vm2, %v107_v7, %v123_v10 }
  0x8e   :  { %v127_v15 = vsel %vm126_vm3, %v108_v9, %v125_v13 }
  0x8f   :  { %v129_v17 = vsel %vm128_vm4, %v109_v12, %v127_v15 }
  0x90   :  { %v131_v18 = vsel %vm130_vm5, %v110_v14, %v129_v17 }
  0x91   :  { %v133_v19 = vsel %vm132_vm6, %v111_v16, %v131_v18 }
  0x92   :  { %135 = vst [vmem:[#allocation6] sm:$0xff] %v133_v19 }
  0x93   :  { %146 = dma.vmem_to_hbm [thread:$0]  %s142_s1, 128, %s144_s24, [#allocation5]  }
  0x94   :  { %209 = dma.done.wait [#allocation5], 128  }
  0x95   :  { %210 = vsyncadd [#allocation5], 4294967168 }
  0x96   :  { %151 = vsyncpa [#allocation4], 1 }
  0x97   :  { %152 = vsyncpa [#allocation5], 1 }

</bundles_post_ra>
